<compile_context>
chip_gen: v5e
topology: v5e:2x2
jax: 0.10.0
libtpu: 0.0.40
codegen_flags: <defaults>
</compile_context>

<pallas_src>
import functools

import jax
import jax.numpy as jnp
from jax.experimental import pallas as pl
from jax.experimental.pallas import tpu as pltpu


def _gelu(x):
    c = 0.7978845608028654  # sqrt(2/pi)
    return 0.5 * x * (1.0 + jnp.tanh(c * (x + 0.044715 * x * x * x)))


def _pick_spatial_tile(S, cap=512):
    """Largest tile <= cap that is a multiple of 8 and divides S (else full S)."""
    if S <= cap:
        return S
    t = cap - (cap % 8)
    while t >= 8:
        if S % t == 0:
            return t
        t -= 8
    return S


def _pick_row_tile(M, cap=512, tile=256):
    """(tile_m, padded_M) for row-tiled MLP kernels."""
    if M <= cap:
        return M, M
    Mpad = ((M + tile - 1) // tile) * tile
    return tile, Mpad


# ----------------------------------------------------------------------------
# Fused 1x1 conv (+ folded BN + ReLU) + global max-pool kernel
# ----------------------------------------------------------------------------

def _conv_pool_kernel(x_ref, w_ref, shift_ref, fmap_ref, pool_ref, *, act):
    # x_ref: (1, tile_s, Cin); w_ref: (Cin, Cout) with BN scale pre-folded;
    # shift_ref: (1, Cout).  pool_ref is resident across the spatial grid axis.
    y = jnp.dot(x_ref[0], w_ref[...], preferred_element_type=jnp.float32)
    y = y + shift_ref[...]
    if act:
        y = jnp.maximum(y, 0.0)
    fmap_ref[0] = y.astype(fmap_ref.dtype)

    tile_max = jnp.max(y, axis=0, keepdims=True)            # (1, Cout)
    s = pl.program_id(1)

    @pl.when(s == 0)
    def _():
        pool_ref[0] = tile_max.astype(pool_ref.dtype)

    @pl.when(s > 0)
    def _():
        pool_ref[0] = jnp.maximum(pool_ref[0], tile_max).astype(pool_ref.dtype)


def conv_bn_relu_pool(x_nhwc, W, shift, act=True):
    """Fused: 1x1 conv (BN folded into W) + optional ReLU + global max-pool.

    Returns (feature_map (B,H,W,Cout), pooled (B,Cout)).
    """
    B, H, Wd, Cin = x_nhwc.shape
    Cout = W.shape[1]
    S = H * Wd
    x = x_nhwc.reshape(B, S, Cin)
    tile_s = _pick_spatial_tile(S)
    n_s = S // tile_s

    fmap, pooled = pl.pallas_call(
        functools.partial(_conv_pool_kernel, act=act),
        out_shape=(jax.ShapeDtypeStruct((B, S, Cout), x.dtype),
                   jax.ShapeDtypeStruct((B, 1, Cout), x.dtype)),
        grid=(B, n_s),
        in_specs=[
            pl.BlockSpec((1, tile_s, Cin), lambda b, s: (b, s, 0)),
            pl.BlockSpec((Cin, Cout), lambda b, s: (0, 0)),
            pl.BlockSpec((1, Cout), lambda b, s: (0, 0)),
        ],
        out_specs=(pl.BlockSpec((1, tile_s, Cout), lambda b, s: (b, s, 0)),
                   pl.BlockSpec((1, 1, Cout), lambda b, s: (b, 0, 0))),
        compiler_params=pltpu.CompilerParams(
            dimension_semantics=("parallel", "arbitrary")),
    )(x, W, shift)
    return fmap.reshape(B, H, Wd, Cout), pooled.reshape(B, Cout)


# ----------------------------------------------------------------------------
# FcNet heads (all three in one pallas_call, BN fully folded)
# ----------------------------------------------------------------------------

def _fcnet_kernel(x_ref, w1_ref, b1_ref, w2_ref, o_ref):
    # input_bn + fc1 + fc_bn folded on the host into (W1, B1):  h = x @ W1 + B1
    x = x_ref[0].astype(jnp.float32)
    h = jnp.dot(x, w1_ref[0], preferred_element_type=jnp.float32) + b1_ref[0]
    h = _gelu(h)
    y = jnp.dot(h, w2_ref[0], preferred_element_type=jnp.float32)
    o_ref[0] = y.astype(o_ref.dtype)


def fcnet_forward_multi(xs, plist):
    """Runs the three FcNet heads in one kernel launch (grid over heads)."""
    n = len(xs)
    Bmax = max(int(x.shape[0]) for x in xs)
    E = xs[0].shape[1]
    xs_p = jnp.stack(
        [jnp.pad(x, ((0, Bmax - x.shape[0]), (0, 0))) for x in xs], axis=0)
    W1 = jnp.stack([p["W1"] for p in plist])            # (n, E, H)
    B1 = jnp.stack([p["B1"] for p in plist])            # (n, 1, H)
    W2 = jnp.stack([p["W2"] for p in plist])            # (n, H, C)
    Hh = W1.shape[2]
    C = W2.shape[2]

    out = pl.pallas_call(
        _fcnet_kernel,
        out_shape=jax.ShapeDtypeStruct((n, Bmax, C), xs[0].dtype),
        grid=(n,),
        in_specs=[
            pl.BlockSpec((1, Bmax, E), lambda i: (i, 0, 0)),
            pl.BlockSpec((1, E, Hh), lambda i: (i, 0, 0)),
            pl.BlockSpec((1, 1, Hh), lambda i: (i, 0, 0)),
            pl.BlockSpec((1, Hh, C), lambda i: (i, 0, 0)),
        ],
        out_specs=pl.BlockSpec((1, Bmax, C), lambda i: (i, 0, 0)),
        compiler_params=pltpu.CompilerParams(dimension_semantics=("parallel",)),
    )(xs_p, W1, B1, W2)
    return [out[i, :xs[i].shape[0]] for i in range(n)]


# ----------------------------------------------------------------------------
# FdaNet (input LayerNorm affine folded into fc1), row-tiled
# ----------------------------------------------------------------------------

def _fdanet_kernel(x_ref, w1_ref, b1_ref, g2_ref, b2_ref, w2_ref, o_ref, *, eps):
    x = x_ref[...].astype(jnp.float32)
    mu = jnp.mean(x, axis=-1, keepdims=True)                 # input_ln (affine folded)
    var = jnp.mean(jnp.square(x - mu), axis=-1, keepdims=True)
    xn = (x - mu) * jax.lax.rsqrt(var + eps)
    h = jnp.dot(xn, w1_ref[...], preferred_element_type=jnp.float32) + b1_ref[...]
    mu2 = jnp.mean(h, axis=-1, keepdims=True)                # fc_ln
    var2 = jnp.mean(jnp.square(h - mu2), axis=-1, keepdims=True)
    h = (h - mu2) * jax.lax.rsqrt(var2 + eps) * g2_ref[...] + b2_ref[...]
    h = _gelu(h)
    y = jnp.dot(h, w2_ref[...], preferred_element_type=jnp.float32)
    o_ref[...] = (1.0 / (1.0 + jnp.exp(-y))).astype(o_ref.dtype)


def fdanet_forward(mixed_nhwc, patch_ref_indices, p):
    kh, kw = p["pool"]
    B2, H, W, C = mixed_nhwc.shape
    h, w = H // kh, W // kw
    # Non-overlapping MaxPool2d (kernel == stride): tiny window reduction in glue.
    x = mixed_nhwc.reshape(B2, h, kh, w, kw, C).max(axis=(2, 4))
    x = x.reshape(B2, h * w, C)
    b = B2 // 2
    ori, isom = x[:b], x[b:]
    # torch.stack([ori_features[i, patch_ref_indices[i]] for i in range(b)])
    ori = jnp.take_along_axis(ori, patch_ref_indices[..., None], axis=1)
    x = jnp.concatenate([ori, isom], axis=0)                 # (2b, h*w, C)

    M = B2 * h * w
    Hh = p["W1"].shape[1]
    L = p["w2"].shape[1]
    tile_m, Mpad = _pick_row_tile(M)
    x2 = x.reshape(M, C)
    if Mpad != M:
        x2 = jnp.pad(x2, ((0, Mpad - M), (0, 0)))            # rows are independent

    y = pl.pallas_call(
        functools.partial(_fdanet_kernel, eps=p["eps"]),
        out_shape=jax.ShapeDtypeStruct((Mpad, L), x2.dtype),
        grid=(Mpad // tile_m,),
        in_specs=[
            pl.BlockSpec((tile_m, C), lambda i: (i, 0)),
            pl.BlockSpec((C, Hh), lambda i: (0, 0)),
            pl.BlockSpec((1, Hh), lambda i: (0, 0)),
            pl.BlockSpec((1, Hh), lambda i: (0, 0)),
            pl.BlockSpec((1, Hh), lambda i: (0, 0)),
            pl.BlockSpec((Hh, L), lambda i: (0, 0)),
        ],
        out_specs=pl.BlockSpec((tile_m, L), lambda i: (i, 0)),
        compiler_params=pltpu.CompilerParams(dimension_semantics=("parallel",)),
    )(x2, p["W1"], p["B1"], p["g2"], p["b2"], p["w2"])
    return y[:M].reshape(B2, h * w, L)


# ----------------------------------------------------------------------------
# Parameters (with host-side BN/LN-affine folding) / synthetic stem / forward
# ----------------------------------------------------------------------------

def init_params(key, channels_list, embedding_dim, atte_hidden_unit,
                latent_features, num_class, pool_sizes):
    keys = iter(jax.random.split(key, 128))

    def nrm(shape, scale=1.0):
        return jax.random.normal(next(keys), shape, jnp.float32) * scale

    def bn_fold(dim, eps):
        gamma = 1.0 + 0.1 * nrm((dim,))
        beta = 0.1 * nrm((dim,))
        mean = 0.1 * nrm((dim,))
        var = jnp.abs(nrm((dim,))) + 1.0
        s = gamma * jax.lax.rsqrt(var + eps)
        return s, beta - mean * s

    E, Hh = embedding_dim, atte_hidden_unit
    params = {"stem": [], "fcnv": [], "ccls": [], "fdam": []}

    # Synthetic stem projections (3 -> c); identity "BN".
    for c in channels_list:
        params["stem"].append({
            "W": nrm((3, c), 1.0 / jnp.sqrt(3.0)),
            "shift": jnp.zeros((1, c), jnp.float32),
        })

    # Conv2dBA(c -> E, k=1, bn=True, act=True): BN scale folded into conv weight.
    for c in channels_list:
        w = nrm((c, E), 1.0 / jnp.sqrt(float(c)))
        s, sh = bn_fold(E, 1e-5)
        params["fcnv"].append({"W": w * s[None, :], "shift": sh.reshape(1, E)})

    # FcNet: input_bn + fc1 + fc_bn folded into (W1, B1); then GELU; then fc2.
    for _ in range(3):
        s1, c1 = bn_fold(E, 1e-8)
        w1 = nrm((E, E), 1.0 / jnp.sqrt(float(E)))
        s2, c2 = bn_fold(E, 1e-8)
        w2 = nrm((E, num_class), 1.0 / jnp.sqrt(float(E)))
        W1 = (s1[:, None] * w1) * s2[None, :]
        B1 = (c1 @ w1) * s2 + c2
        params["ccls"].append({"W1": W1, "B1": B1.reshape(1, -1), "W2": w2})

    # FdaNet: input_ln affine folded into fc1; fc_ln affine kept (can't cross GELU).
    for pool in pool_sizes:
        g1 = 1.0 + 0.1 * nrm((E,))
        b1 = 0.1 * nrm((E,))
        w1 = nrm((E, Hh), 1.0 / jnp.sqrt(float(E)))
        g2 = 1.0 + 0.1 * nrm((Hh,))
        b2 = 0.1 * nrm((Hh,))
        w2 = nrm((Hh, latent_features), 1.0 / jnp.sqrt(float(Hh)))
        params["fdam"].append({
            "pool": pool, "eps": 1e-8,
            "W1": g1[:, None] * w1,
            "B1": (b1 @ w1).reshape(1, Hh),
            "g2": g2.reshape(1, Hh), "b2": b2.reshape(1, Hh),
            "w2": w2,
        })
    return params


def synthetic_stem(img_nchw, stem_ps):
    # TODO(synk): `Extactor(bb_name, bb_weight_path)` is a pretrained CNN backbone; no
    # checkpoint is loaded here -- it is replaced by a deterministic avg-pool downsample
    # followed by a Pallas pointwise projection at each of the three scales.
    x = jnp.transpose(img_nchw, (0, 2, 3, 1)).astype(jnp.float32)   # NHWC
    B, H, W, Cin = x.shape
    feats = []
    for s, p in zip((2, 4, 8), stem_ps):
        h, w = H // s, W // s
        xs = x.reshape(B, h, s, w, s, Cin).mean(axis=(2, 4))
        fmap, _ = conv_bn_relu_pool(xs, p["W"], p["shift"], act=True)
        feats.append(fmap)
    return feats


def representation_forward(params, img, low_patch_indices=None, mid_patch_indices=None,
                           hig_patch_indices=None, step="final"):
    low_fea, mid_fea, hig_fea = synthetic_stem(img, params["stem"])

    def conv(i, fea):
        p = params["fcnv"][i]
        return conv_bn_relu_pool(fea, p["W"], p["shift"], act=True)

    if step == "coarse":
        B = low_fea.shape[0]
        assert B % 4 == 0
        b = B // 4
        low_fea, low_vec = conv(0, low_fea)
        mid_fea, mid_vec = conv(1, mid_fea[:3 * b])
        hig_fea, hig_vec = conv(2, hig_fea[:2 * b])
        low_logits, mid_logits, hig_logits = fcnet_forward_multi(
            [low_vec, mid_vec, hig_vec], params["ccls"])
        low_mix = jnp.concatenate([low_fea[:b], low_fea[-b:]], axis=0)
        low_fda = fdanet_forward(low_mix, low_patch_indices, params["fdam"][0])
        mid_mix = jnp.concatenate([mid_fea[:b], mid_fea[-b:]], axis=0)
        mid_fda = fdanet_forward(mid_mix, mid_patch_indices, params["fdam"][1])
        hig_fda = fdanet_forward(hig_fea, hig_patch_indices, params["fdam"][2])
        return (low_logits, mid_logits, hig_logits, low_fda, mid_fda, hig_fda)
    else:
        low_fea, low_vec = conv(0, low_fea)
        mid_fea, mid_vec = conv(1, mid_fea)
        hig_fea, hig_vec = conv(2, hig_fea)
        # Return feature maps in PyTorch's NCHW layout (boundary transpose only).
        low_nchw = jnp.transpose(low_fea, (0, 3, 1, 2))
        mid_nchw = jnp.transpose(mid_fea, (0, 3, 1, 2))
        hig_nchw = jnp.transpose(hig_fea, (0, 3, 1, 2))
        if step == "fine":
            return (low_nchw, mid_nchw, hig_nchw, low_vec, mid_vec, hig_vec)
        low_logits, mid_logits, hig_logits = fcnet_forward_multi(
            [low_vec, mid_vec, hig_vec], params["ccls"])
        return (low_nchw, mid_nchw, hig_nchw, low_vec, mid_vec, hig_vec,
                low_logits, mid_logits, hig_logits)


if __name__ == "__main__":
    key = jax.random.PRNGKey(0)
    channels_list = (8, 16, 32)
    embedding_dim = 32
    atte_hidden_unit = 32
    latent_features = 16
    num_class = 5
    # MaxPool2d(*pool_size) with kernel == stride -> 4x4 patch grid at every scale.
    pool_sizes = ((4, 4), (2, 2), (1, 1))

    pkey, ikey, lkey, mkey, hkey = jax.random.split(key, 5)
    params = init_params(pkey, channels_list, embedding_dim, atte_hidden_unit,
                         latent_features, num_class, pool_sizes)

    B = 4
    img = jax.random.normal(ikey, (B, 3, 32, 32), jnp.float32)

    # step='final' (default path)
    outs_final = representation_forward(params, img, step="final")
    outs_final = jax.block_until_ready(outs_final)

    # step='coarse' (exercises FdaNet): patch ref indices are permutations of the
    # pooled 4x4 patch grid (16 patches) per original sample.
    b = B // 4
    n_patch = 16
    low_idx = jnp.stack([jax.random.permutation(jax.random.fold_in(lkey, i), n_patch)
                         for i in range(b)]).astype(jnp.int32)
    mid_idx = jnp.stack([jax.random.permutation(jax.random.fold_in(mkey, i), n_patch)
                         for i in range(b)]).astype(jnp.int32)
    hig_idx = jnp.stack([jax.random.permutation(jax.random.fold_in(hkey, i), n_patch)
                         for i in range(b)]).astype(jnp.int32)
    outs_coarse = representation_forward(params, img, low_idx, mid_idx, hig_idx,
                                         step="coarse")
    outs_coarse = jax.block_until_ready(outs_coarse)

    print("KERNEL_OK")
</pallas_src>

<mosaic_0001>
module attributes {stable_mosaic.version = 11 : i64} {
  func.func @_conv_pool_kernel(%arg0: i32, %arg1: i32, %arg2: memref<1x256x3xf32, #tpu.memory_space<vmem>>, %arg3: memref<3x8xf32, #tpu.memory_space<vmem>>, %arg4: memref<1x8xf32, #tpu.memory_space<vmem>>, %arg5: memref<1x256x8xf32, #tpu.memory_space<vmem>>, %arg6: memref<1x1x8xf32, #tpu.memory_space<vmem>>) attributes {dimension_semantics = [#tpu.dimension_semantics<parallel>, #tpu.dimension_semantics<arbitrary>], iteration_bounds = array<i64: 4, 1>, scalar_prefetch = 0 : i64, scratch_operands = 0 : i64, tpu.core_type = #tpu.core_type<tc>, window_params = [{transform_indices = @transform_0, window_bounds = array<i64: 1, 256, 3>}, {pipeline_mode = #tpu.pipeline_mode<synchronous>, transform_indices = @transform_1, window_bounds = array<i64: 3, 8>}, {pipeline_mode = #tpu.pipeline_mode<synchronous>, transform_indices = @transform_2, window_bounds = array<i64: 1, 8>}, {transform_indices = @transform_3, window_bounds = array<i64: 1, 256, 8>}, {transform_indices = @transform_4, window_bounds = array<i64: 1, 1, 8>}]} {
    %c0 = arith.constant 0 : index
    %c0_0 = arith.constant 0 : index
    %c0_1 = arith.constant 0 : index
    %0 = vector.load %arg2[%c0, %c0_0, %c0_1] : memref<1x256x3xf32, #tpu.memory_space<vmem>>, vector<1x256x3xf32>
    %1 = vector.shape_cast %0 : vector<1x256x3xf32> to vector<256x3xf32>
    %c0_2 = arith.constant 0 : index
    %c0_3 = arith.constant 0 : index
    %2 = vector.load %arg3[%c0_2, %c0_3] : memref<3x8xf32, #tpu.memory_space<vmem>>, vector<3x8xf32>
    %cst = arith.constant dense<0.000000e+00> : vector<256x8xf32>
    %3 = tpu.matmul %1, %2, %cst {dimension_numbers = #tpu.dot_dimension_numbers<[1], [0], [0], [1], [0, 0, 1, 1], [], []>} : vector<256x3xf32>, vector<3x8xf32>, vector<256x8xf32> -> vector<256x8xf32>
    %c0_4 = arith.constant 0 : index
    %c0_5 = arith.constant 0 : index
    %4 = vector.load %arg4[%c0_4, %c0_5] : memref<1x8xf32, #tpu.memory_space<vmem>>, vector<1x8xf32>
    %5 = vector.broadcast %4 : vector<1x8xf32> to vector<256x8xf32>
    %6 = arith.addf %3, %5 : vector<256x8xf32>
    %cst_6 = arith.constant 0.000000e+00 : f32
    %7 = vector.broadcast %cst_6 : f32 to vector<256x8xf32>
    %8 = arith.maximumf %6, %7 : vector<256x8xf32>
    %c0_7 = arith.constant 0 : index
    %c0_8 = arith.constant 0 : index
    %c0_9 = arith.constant 0 : index
    %9 = vector.load %arg5[%c0_7, %c0_8, %c0_9] : memref<1x256x8xf32, #tpu.memory_space<vmem>>, vector<1x256x8xf32>
    %10 = vector.shape_cast %9 : vector<1x256x8xf32> to vector<256x8xf32>
    %11 = vector.shape_cast %8 : vector<256x8xf32> to vector<1x256x8xf32>
    tpu.vector_store %arg5[%c0_7, %c0_8, %c0_9], %11 {strides = array<i32>} : memref<1x256x8xf32, #tpu.memory_space<vmem>>, vector<1x256x8xf32>,
    %cst_10 = arith.constant dense<0xFF800000> : vector<8xf32>
    %12 = vector.multi_reduction <maximumf>, %8, %cst_10 [0] : vector<256x8xf32> to vector<8xf32>
    %13 = vector.shape_cast %12 : vector<8xf32> to vector<1x8xf32>
    %c0_i32 = arith.constant 0 : i32
    %14 = arith.cmpi eq, %arg1, %c0_i32 : i32
    %15 = arith.extui %14 : i1 to i32
    %c0_i32_11 = arith.constant 0 : i32
    %16 = arith.cmpi ne, %15, %c0_i32_11 : i32
    scf.if %16 {
      %c0_14 = arith.constant 0 : index
      %c0_15 = arith.constant 0 : index
      %c0_16 = arith.constant 0 : index
      %20 = vector.load %arg6[%c0_14, %c0_15, %c0_16] : memref<1x1x8xf32, #tpu.memory_space<vmem>>, vector<1x1x8xf32>
      %21 = vector.shape_cast %20 : vector<1x1x8xf32> to vector<1x8xf32>
      %22 = vector.shape_cast %13 : vector<1x8xf32> to vector<1x1x8xf32>
      tpu.vector_store %arg6[%c0_14, %c0_15, %c0_16], %22 {strides = array<i32>} : memref<1x1x8xf32, #tpu.memory_space<vmem>>, vector<1x1x8xf32>,
    } else {
    }
    %c0_i32_12 = arith.constant 0 : i32
    %17 = arith.cmpi sgt, %arg1, %c0_i32_12 : i32
    %18 = arith.extui %17 : i1 to i32
    %c0_i32_13 = arith.constant 0 : i32
    %19 = arith.cmpi ne, %18, %c0_i32_13 : i32
    scf.if %19 {
      %c0_14 = arith.constant 0 : index
      %c0_15 = arith.constant 0 : index
      %c0_16 = arith.constant 0 : index
      %20 = vector.load %arg6[%c0_14, %c0_15, %c0_16] : memref<1x1x8xf32, #tpu.memory_space<vmem>>, vector<1x1x8xf32>
      %21 = vector.shape_cast %20 : vector<1x1x8xf32> to vector<1x8xf32>
      %22 = arith.maximumf %21, %13 : vector<1x8xf32>
      %c0_17 = arith.constant 0 : index
      %c0_18 = arith.constant 0 : index
      %c0_19 = arith.constant 0 : index
      %23 = vector.load %arg6[%c0_17, %c0_18, %c0_19] : memref<1x1x8xf32, #tpu.memory_space<vmem>>, vector<1x1x8xf32>
      %24 = vector.shape_cast %23 : vector<1x1x8xf32> to vector<1x8xf32>
      %25 = vector.shape_cast %22 : vector<1x8xf32> to vector<1x1x8xf32>
      tpu.vector_store %arg6[%c0_17, %c0_18, %c0_19], %25 {strides = array<i32>} : memref<1x1x8xf32, #tpu.memory_space<vmem>>, vector<1x1x8xf32>,
    } else {
    }
    return
  }
  func.func @transform_0(%arg0: i32, %arg1: i32) -> (i32, i32, i32) {
    %c0_i32 = arith.constant 0 : i32
    %c0_i32_0 = arith.constant 0 : i32
    return %arg0, %arg1, %c0_i32 : i32, i32, i32
  }
  func.func @transform_1(%arg0: i32, %arg1: i32) -> (i32, i32) {
    %c0_i32 = arith.constant 0 : i32
    %c0_i32_0 = arith.constant 0 : i32
    %c0_i32_1 = arith.constant 0 : i32
    return %c0_i32, %c0_i32_0 : i32, i32
  }
  func.func @transform_2(%arg0: i32, %arg1: i32) -> (i32, i32) {
    %c0_i32 = arith.constant 0 : i32
    %c0_i32_0 = arith.constant 0 : i32
    %c0_i32_1 = arith.constant 0 : i32
    return %c0_i32, %c0_i32_0 : i32, i32
  }
  func.func @transform_3(%arg0: i32, %arg1: i32) -> (i32, i32, i32) {
    %c0_i32 = arith.constant 0 : i32
    %c0_i32_0 = arith.constant 0 : i32
    return %arg0, %arg1, %c0_i32 : i32, i32, i32
  }
  func.func @transform_4(%arg0: i32, %arg1: i32) -> (i32, i32, i32) {
    %c0_i32 = arith.constant 0 : i32
    %c0_i32_0 = arith.constant 0 : i32
    %c0_i32_1 = arith.constant 0 : i32
    return %arg0, %c0_i32, %c0_i32_0 : i32, i32, i32
  }
}

</mosaic_0001>

<bundles_post_ra>
// kernel: tpu_custom_call.1
= control target key start
LH: loop header
LB: loop body
LE: loop exit
PB: predicated region body
PF: predicated region fallthrough
CT: control target
= control target key end

     0   :  { %10 = vsyncpa [#allocation3], 0  ;;  %s1299_s0 = inlined_call_operand.vmem [shape: f32[4,256,3], index: 0, kind: input, shape index: {}]   ;;  %s1300_s1 = inlined_call_operand.vmem [shape: f32[3,8], index: 1, kind: input, shape index: {}]   ;;  %s1301_s2 = inlined_call_operand.vmem [shape: f32[1,8], index: 2, kind: input, shape index: {}]   ;;  %s1302_s3 = inlined_call_operand.vmem [shape: f32[4,256,8], index: 3, kind: output, shape index: {0}]   ;;  %s1303_s4 = inlined_call_operand.hbm [shape: f32[4,1,8], index: 4, kind: output, shape index: {1}]  }
   0x1   :  { %12 = vsyncpa [#allocation3 + $0x1], 0  ;;  %s988_s15 = smov 0   ;;  %s990_s16 = smov 0  }
   0x2   :  { %s992_s17 = smov 0   ;;  %s994_s18 = smov 0  }
   0x3   :  { %s996_s19 = smov 0   ;;  %s998_s20 = smov 0  }
   0x4 LB: > { %s778_s21 = sadd.s32 4294967295, %s961_s20   ;;  %s779_s22 = sadd.s32 4294967294, %s961_s20   ;;  %s961_s20 = sphi %s998_s20, %s18_s20   ;;  %s957_s19 = sphi %s996_s19, %s1310_s19   ;;  %s953_s18 = sphi %s994_s18, %s1309_s18   ;;  %s949_s17 = sphi %s992_s17, %s1308_s17   ;;  %s945_s16 = sphi %s990_s16, %s1307_s16   ;;  %s941_s15 = sphi %s988_s15, %s1306_s15  }
   0x5   : > { %s30_s23 = sadd.s32 1, %s957_s19  ;;  %s135_s24 = sadd.s32 1, %s949_s17 }
   0x6   : > { %p32_p0 = scmp.ge.s32.totalorder %s30_s23, 4  ;;  %p145_p1 = scmp.ne.s32.totalorder %s949_s17, %s945_s16 }
   0x7   : > { %p146_p2 = scmp.eq.s32.totalorder %s778_s21, 3  ;;  %p151_p3 = scmp.ne.s32.totalorder %s945_s16, %s941_s15 }
   0x8   : > { %s1312_s23 = smov (%p32_p0, %s30_s23), 0  ;;  %p152_p5 = scmp.eq.s32.totalorder %s779_s22, 3 }
   0x9   : > { %p1028_p4 = por %p146_p2, %p145_p1  ;;  %s132_s26 = ssub.s32 %s957_s19, %s1312_s23 }
   0xa   : > { %p782_p6 = scmp.ge.s32.totalorder %s961_s20, 1  ;;  %p133_p7 = scmp.eq.s32.totalorder %s132_s26, 0 }
   0xb   : > { %p1035_p8 = por %p152_p5, %p151_p3  ;;  %p189_p9 = scmp.lt.s32.totalorder %s961_s20, 5 }
   0xc   : > { %s1041_s28 = scalar_select %p133_p7, %s949_s17, %s135_s24  }
   0xd   : > { %p190_p10 = pnand %p782_p6, %p189_p9 }
   0xe   : > { %p228_p11 = scmp.lt.s32.totalorder (!%p190_p10), %s953_s18, 3  ;;  %s225_s21 = sand.u32 (!%p190_p10), 1, %s945_s16  }
   0xf   : > { %193 = sbr.rel (%p190_p10) target bundleno = 239 (0xef), region = 32  ;;  %s668_s26 = scalar_lea.hbm (!%p190_p10), %s1303_s4, %s953_s18 }
  0x10   : > { %s226_s29 = scalar_lea.vmem (!%p190_p10), [#allocation2], %s225_s21  ;;  %s903_s10 = scalar_lea.hbm (!%p190_p10), %s1303_s4, 4 }
  0x11   : > { %s670_s30 = sshll.u32 (!%p190_p10), %s226_s29, 4  ;;  %s671_s30 = int_to_ptr.vmem [resolvable:$true] %s670_s30 }
  0x14   : > { %v279_v0 = vld [vmem:[%s1300_s1] sm:$0x7]  ;;  %vm381_vm0 = vcmask 1042432   ;;  %s1048_s5 = scalar_select %p228_p11, %s953_s18, 3  ;;  %vm284_vm1 = vcmask 23552   ;;  %vm530_vm2 = vcmask 64512  }
  0x15   : > { %787 = vmatpush.msk.msra.mxu0 %vm381_vm0, %v279_v0  ;;  %825 = vmatpush.msk.msra.mxu2 %vm381_vm0, %v279_v0  ;;  %v1125_v33 = vld [vmem:[%s1301_s2] ss:$0 sm:$0xff]  ;;  %vm636_vm3 = vcmask 57344  }
  0x16   : > { %824 = vmatpush.msk.msra.mxu1 %vm381_vm0, %v279_v0  ;;  %826 = vmatpush.msk.msra.mxu3 %vm381_vm0, %v279_v0  ;;  %s822_s6 = sshll.u32 %s1048_s5, 8  ;;  %s672_s5 = sshll.u32 %s668_s26, 4  ;;  %s673_s5 = int_to_ptr.hbm [resolvable:$true] %s672_s5 }
  0x17   : > { %s1056_s9 = scalar_lea.vmem %s1299_s0, %s822_s6  ;;  %s1133_s14 = scalar_lea.vmem %s1302_s3, %s822_s6 }
  0x18   : > { %v247_v1 = vld [vmem:[%s1056_s9] sm:$0xff]  ;;  %v248_v5 = vld [vmem:[%s1056_s9 + $0x8] sm:$0xff]  ;;  %v249_v9 = vld [vmem:[%s1056_s9 + $0x10] sm:$0xff]  ;;  %s656_s6 = scalar_lea.sflag [#allocation3], %s225_s21  ;;  %s897_s7 = sshra.s32 %s673_s5, 4  ;;  %s898_s7 = int_to_ptr.hbm [resolvable:$true] %s897_s7 }
  0x19   : > { %v263_v2 = vld [vmem:[%s1056_s9 + $0x80] sm:$0xff]  ;;  %788 = vmatmul.msk.f32.vlgmr.msra.gmra.mxu0 %vm284_vm1, %v247_v1  ;;  %v264_v6 = vld [vmem:[%s1056_s9 + $0x88] sm:$0xff]  ;;  %v265_v10 = vld [vmem:[%s1056_s9 + $0x90] sm:$0xff]  ;;  %s899_s8 = scalar_lea.hbm %s898_s7, 1  ;;  %p904_p1 = scmp.lt.s32.totalorder %s898_s7, %s1303_s4 }
  0x1a   : > { %v255_v3 = vld [vmem:[%s1056_s9 + $0x40] sm:$0xff]  ;;  %804 = vmatmul.msk.f32.vlgmr.msra.gmra.mxu2 %vm284_vm1, %v263_v2  ;;  %v256_v7 = vld [vmem:[%s1056_s9 + $0x48] sm:$0xff]  ;;  %v257_v11 = vld [vmem:[%s1056_s9 + $0x50] sm:$0xff]  ;;  %p900_p12 = scmp.ne.s32.totalorder %s898_s7, %s899_s8  ;;  %p905_p2 = scmp.lt.s32.totalorder %s903_s10, %s899_s8 }
  0x1b   : > { %v271_v4 = vld [vmem:[%s1056_s9 + $0xc0] sm:$0xff]  ;;  %796 = vmatmul.msk.f32.vlgmr.msra.gmra.mxu1 %vm284_vm1, %v255_v3  ;;  %v272_v8 = vld [vmem:[%s1056_s9 + $0xc8] sm:$0xff]  ;;  %v273_v12 = vld [vmem:[%s1056_s9 + $0xd0] sm:$0xff] }
  0x1c   : > { %812 = vmatmul.msk.f32.vlgmr.msra.gmra.mxu3 %vm284_vm1, %v271_v4  ;;  %v250_v13 = vld [vmem:[%s1056_s9 + $0x18] sm:$0xff]  ;;  %v251_v17 = vld [vmem:[%s1056_s9 + $0x20] sm:$0xff]  ;;  %v252_v21 = vld [vmem:[%s1056_s9 + $0x28] sm:$0xff]  ;;  %p901_p13 = pnand %p900_p12, %p1028_p4  ;;  %p906_p3 = por %p905_p2, %p904_p1 }
  0x1d   : > { %v266_v14 = vld [vmem:[%s1056_s9 + $0x98] sm:$0xff]  ;;  %v267_v18 = vld [vmem:[%s1056_s9 + $0xa0] sm:$0xff]  ;;  %v268_v22 = vld [vmem:[%s1056_s9 + $0xa8] sm:$0xff] }
  0x1e   : > { %v258_v15 = vld [vmem:[%s1056_s9 + $0x58] sm:$0xff]  ;;  %v259_v19 = vld [vmem:[%s1056_s9 + $0x60] sm:$0xff]  ;;  %v260_v23 = vld [vmem:[%s1056_s9 + $0x68] sm:$0xff]  ;;  %p902_p0 = pneg %p901_p13 }
  0x1f   : > { %v274_v16 = vld [vmem:[%s1056_s9 + $0xd8] sm:$0xff]  ;;  %v275_v20 = vld [vmem:[%s1056_s9 + $0xe0] sm:$0xff]  ;;  %v276_v24 = vld [vmem:[%s1056_s9 + $0xe8] sm:$0xff] }
  0x20   : > { %v253_v25 = vld [vmem:[%s1056_s9 + $0x30] sm:$0xff]  ;;  %v254_v29 = vld [vmem:[%s1056_s9 + $0x38] sm:$0xff]  ;;  %p907_p5 = pnand %p906_p3, %p902_p0 }
  0x21   : > { %789 = vmatmul.msk.f32.gmra.mxu0 %vm284_vm1, %v248_v5  ;;  %v269_v26 = vld [vmem:[%s1056_s9 + $0xb0] sm:$0xff]  ;;  %v270_v30 = vld [vmem:[%s1056_s9 + $0xb8] sm:$0xff] }
  0x22   : > { %805 = vmatmul.msk.f32.gmra.mxu2 %vm284_vm1, %v264_v6  ;;  %v261_v27 = vld [vmem:[%s1056_s9 + $0x70] sm:$0xff]  ;;  %v262_v31 = vld [vmem:[%s1056_s9 + $0x78] sm:$0xff] }
  0x23   : > { %797 = vmatmul.msk.f32.gmra.mxu1 %vm284_vm1, %v256_v7  ;;  %v277_v28 = vld [vmem:[%s1056_s9 + $0xf0] sm:$0xff]  ;;  %v278_v32 = vld [vmem:[%s1056_s9 + $0xf8] sm:$0xff] }
  0x24   : > { %813 = vmatmul.msk.f32.gmra.mxu3 %vm284_vm1, %v272_v8 }
  0x29   : > { %790 = vmatmul.msk.f32.gmra.mxu0 %vm284_vm1, %v249_v9 }
  0x2a   : > { %806 = vmatmul.msk.f32.gmra.mxu2 %vm284_vm1, %v265_v10 }
  0x2b   : > { %798 = vmatmul.msk.f32.gmra.mxu1 %vm284_vm1, %v257_v11 }
  0x2c   : > { %814 = vmatmul.msk.f32.gmra.mxu3 %vm284_vm1, %v273_v12 }
  0x31   : > { %791 = vmatmul.msk.f32.gmra.mxu0 %vm284_vm1, %v250_v13 }
  0x32   : > { %807 = vmatmul.msk.f32.gmra.mxu2 %vm284_vm1, %v266_v14 }
  0x33   : > { %799 = vmatmul.msk.f32.gmra.mxu1 %vm284_vm1, %v258_v15 }
  0x34   : > { %815 = vmatmul.msk.f32.gmra.mxu3 %vm284_vm1, %v274_v16 }
  0x39   : > { %792 = vmatmul.msk.f32.gmra.mxu0 %vm284_vm1, %v251_v17 }
  0x3a   : > { %808 = vmatmul.msk.f32.gmra.mxu2 %vm284_vm1, %v267_v18 }
  0x3b   : > { %800 = vmatmul.msk.f32.gmra.mxu1 %vm284_vm1, %v259_v19 }
  0x3c   : > { %816 = vmatmul.msk.f32.gmra.mxu3 %vm284_vm1, %v275_v20 }
  0x41   : > { %793 = vmatmul.msk.f32.gmra.mxu0 %vm284_vm1, %v252_v21 }
  0x42   : > { %809 = vmatmul.msk.f32.gmra.mxu2 %vm284_vm1, %v268_v22 }
  0x43   : > { %801 = vmatmul.msk.f32.gmra.mxu1 %vm284_vm1, %v260_v23 }
  0x44   : > { %817 = vmatmul.msk.f32.gmra.mxu3 %vm284_vm1, %v276_v24 }
  0x49   : > { %794 = vmatmul.msk.f32.gmra.mxu0 %vm284_vm1, %v253_v25 }
  0x4a   : > { %810 = vmatmul.msk.f32.gmra.mxu2 %vm284_vm1, %v269_v26 }
  0x4b   : > { %802 = vmatmul.msk.f32.gmra.mxu1 %vm284_vm1, %v261_v27 }
  0x4c   : > { %818 = vmatmul.msk.f32.gmra.mxu3 %vm284_vm1, %v277_v28 }
  0x51   : > { %795 = vmatmul.msk.f32.gmra.mxu0 %vm284_vm1, %v254_v29 }
  0x52   : > { %811 = vmatmul.msk.f32.gmra.mxu2 %vm284_vm1, %v270_v30 }
  0x53   : > { %803 = vmatmul.msk.f32.gmra.mxu1 %vm284_vm1, %v262_v31 }
  0x54   : > { %819 = vmatmul.msk.f32.gmra.mxu3 %vm284_vm1, %v278_v32 }
  0x96   : > { %v402_v34 = vpop.f32.mrf.mxu0 }
  0x97   : > { %v403_v35 = vadd.f32 %v1125_v33, %v402_v34 }
  0x98   : > { %v426_v36 = vpop.f32.mrf.mxu1 }
  0x99   : > { %v427_v37 = vadd.f32 %v1125_v33, %v426_v36  ;;  %v498_v38 = vmax.f32 %v403_v35, 0.0 }
  0x9b   : > { %v506_v39 = vmax.f32 %v427_v37, 0.0  ;;  %531 = vst.msk [vmem:[%s1133_s14] sm:$0xff] %vm530_vm2, %v498_v38  ;;  %v563_v45 = vsel %vm530_vm2, %v498_v38, -inf }
  0x9d   : > { %539 = vst.msk [vmem:[%s1133_s14 + $0x40] sm:$0xff] %vm530_vm2, %v506_v39  ;;  %v450_v40 = vpop.f32.mrf.mxu2  ;;  %v575_v46 = vsel %vm530_vm2, %v506_v39, -inf }
  0x9e   : > { %v451_v41 = vadd.f32 %v1125_v33, %v450_v40  ;;  %v405_v43 = vpop.f32.mrf.mxu0  ;;  %v568_v53 = vmax.f32 %v563_v45, %v575_v46 }
  0x9f   : > { %v474_v42 = vpop.f32.mrf.mxu3  ;;  %v406_v47 = vadd.f32 %v1125_v33, %v405_v43 }
  0xa0   : > { %v475_v44 = vadd.f32 %v1125_v33, %v474_v42  ;;  %v514_v48 = vmax.f32 %v451_v41, 0.0  ;;  %v429_v49 = vpop.f32.mrf.mxu1 }
  0xa1   : > { %v430_v50 = vadd.f32 %v1125_v33, %v429_v49  ;;  %v499_v52 = vmax.f32 %v406_v47, 0.0 }
  0xa2   : > { %v522_v51 = vmax.f32 %v475_v44, 0.0  ;;  %547 = vst.msk [vmem:[%s1133_s14 + $0x80] sm:$0xff] %vm530_vm2, %v514_v48  ;;  %v591_v58 = vsel %vm530_vm2, %v514_v48, -inf }
  0xa3   : > { %v507_v54 = vmax.f32 %v430_v50, 0.0  ;;  %532 = vst.msk [vmem:[%s1133_s14 + $0x8] sm:$0xff] %vm530_vm2, %v499_v52  ;;  %v564_v55 = vsel %vm530_vm2, %v499_v52, -inf }
  0xa4   : > { %555 = vst.msk [vmem:[%s1133_s14 + $0xc0] sm:$0xff] %vm530_vm2, %v522_v51  ;;  %v576_v56 = vmax.f32 %v568_v53, %v564_v55  ;;  %v607_v7 = vsel %vm530_vm2, %v522_v51, -inf }
  0xa5   : > { %540 = vst.msk [vmem:[%s1133_s14 + $0x48] sm:$0xff] %vm530_vm2, %v507_v54  ;;  %v453_v57 = vpop.f32.mrf.mxu2  ;;  %v577_v59 = vsel %vm530_vm2, %v507_v54, -inf }
  0xa6   : > { %v454_v60 = vadd.f32 %v1125_v33, %v453_v57  ;;  %v584_v62 = vmax.f32 %v576_v56, %v591_v58  ;;  %v408_v63 = vpop.f32.mrf.mxu0 }
  0xa7   : > { %v477_v61 = vpop.f32.mrf.mxu3  ;;  %v409_v1 = vadd.f32 %v1125_v33, %v408_v63 }
  0xa8   : > { %v478_v0 = vadd.f32 %v1125_v33, %v477_v61  ;;  %v515_v2 = vmax.f32 %v454_v60, 0.0  ;;  %v432_v3 = vpop.f32.mrf.mxu1  ;;  %v570_v4 = vmax.f32 %v577_v59, %v584_v62 }
  0xa9   : > { %v433_v5 = vadd.f32 %v1125_v33, %v432_v3  ;;  %v500_v8 = vmax.f32 %v409_v1, 0.0 }
  0xaa   : > { %v523_v6 = vmax.f32 %v478_v0, 0.0  ;;  %548 = vst.msk [vmem:[%s1133_s14 + $0x88] sm:$0xff] %vm530_vm2, %v515_v2  ;;  %v592_v9 = vmax.f32 %v607_v7, %v570_v4  ;;  %v593_v14 = vsel %vm530_vm2, %v515_v2, -inf }
  0xab   : > { %v508_v10 = vmax.f32 %v433_v5, 0.0  ;;  %533 = vst.msk [vmem:[%s1133_s14 + $0x10] sm:$0xff] %vm530_vm2, %v500_v8  ;;  %v565_v11 = vsel %vm530_vm2, %v500_v8, -inf }
  0xac   : > { %556 = vst.msk [vmem:[%s1133_s14 + $0xc8] sm:$0xff] %vm530_vm2, %v523_v6  ;;  %v600_v12 = vmax.f32 %v592_v9, %v565_v11  ;;  %v609_v27 = vsel %vm530_vm2, %v523_v6, -inf }
  0xad   : > { %541 = vst.msk [vmem:[%s1133_s14 + $0x50] sm:$0xff] %vm530_vm2, %v508_v10  ;;  %v456_v13 = vpop.f32.mrf.mxu2  ;;  %v579_v15 = vsel %vm530_vm2, %v508_v10, -inf }
  0xae   : > { %v457_v16 = vadd.f32 %v1125_v33, %v456_v13  ;;  %v578_v18 = vmax.f32 %v593_v14, %v600_v12  ;;  %v411_v19 = vpop.f32.mrf.mxu0 }
  0xaf   : > { %v480_v17 = vpop.f32.mrf.mxu3  ;;  %v412_v21 = vadd.f32 %v1125_v33, %v411_v19 }
  0xb0   : > { %v481_v20 = vadd.f32 %v1125_v33, %v480_v17  ;;  %v516_v22 = vmax.f32 %v457_v16, 0.0  ;;  %v435_v23 = vpop.f32.mrf.mxu1  ;;  %v586_v24 = vmax.f32 %v578_v18, %v579_v15 }
  0xb1   : > { %v436_v25 = vadd.f32 %v1125_v33, %v435_v23  ;;  %v501_v28 = vmax.f32 %v412_v21, 0.0 }
  0xb2   : > { %v524_v26 = vmax.f32 %v481_v20, 0.0  ;;  %549 = vst.msk [vmem:[%s1133_s14 + $0x90] sm:$0xff] %vm530_vm2, %v516_v22  ;;  %v608_v29 = vmax.f32 %v609_v27, %v586_v24  ;;  %v595_v35 = vsel %vm530_vm2, %v516_v22, -inf }
  0xb3   : > { %v509_v30 = vmax.f32 %v436_v25, 0.0  ;;  %534 = vst.msk [vmem:[%s1133_s14 + $0x18] sm:$0xff] %vm530_vm2, %v501_v28  ;;  %v566_v31 = vsel %vm530_vm2, %v501_v28, -inf }
  0xb4   : > { %557 = vst.msk [vmem:[%s1133_s14 + $0xd0] sm:$0xff] %vm530_vm2, %v524_v26  ;;  %v616_v32 = vmax.f32 %v608_v29, %v566_v31  ;;  %v611_v48 = vsel %vm530_vm2, %v524_v26, -inf }
  0xb5   : > { %542 = vst.msk [vmem:[%s1133_s14 + $0x58] sm:$0xff] %vm530_vm2, %v509_v30  ;;  %v459_v34 = vpop.f32.mrf.mxu2  ;;  %v581_v36 = vsel %vm530_vm2, %v509_v30, -inf }
  0xb6   : > { %v460_v37 = vadd.f32 %v1125_v33, %v459_v34  ;;  %v572_v39 = vmax.f32 %v595_v35, %v616_v32  ;;  %v414_v40 = vpop.f32.mrf.mxu0 }
  0xb7   : > { %v483_v38 = vpop.f32.mrf.mxu3  ;;  %v415_v42 = vadd.f32 %v1125_v33, %v414_v40 }
  0xb8   : > { %v484_v41 = vadd.f32 %v1125_v33, %v483_v38  ;;  %v517_v43 = vmax.f32 %v460_v37, 0.0  ;;  %v438_v44 = vpop.f32.mrf.mxu1  ;;  %v594_v45 = vmax.f32 %v581_v36, %v572_v39 }
  0xb9   : > { %v439_v46 = vadd.f32 %v1125_v33, %v438_v44  ;;  %v502_v49 = vmax.f32 %v415_v42, 0.0 }
  0xba   : > { %v525_v47 = vmax.f32 %v484_v41, 0.0  ;;  %550 = vst.msk [vmem:[%s1133_s14 + $0x98] sm:$0xff] %vm530_vm2, %v517_v43  ;;  %v602_v50 = vmax.f32 %v594_v45, %v611_v48  ;;  %v597_v55 = vsel %vm530_vm2, %v517_v43, -inf }
  0xbb   : > { %v510_v51 = vmax.f32 %v439_v46, 0.0  ;;  %535 = vst.msk [vmem:[%s1133_s14 + $0x20] sm:$0xff] %vm530_vm2, %v502_v49  ;;  %v567_v52 = vsel %vm530_vm2, %v502_v49, -inf }
  0xbc   : > { %558 = vst.msk [vmem:[%s1133_s14 + $0xd8] sm:$0xff] %vm530_vm2, %v525_v47  ;;  %v580_v53 = vmax.f32 %v567_v52, %v602_v50  ;;  %v613_v4 = vsel %vm530_vm2, %v525_v47, -inf }
  0xbd   : > { %543 = vst.msk [vmem:[%s1133_s14 + $0x60] sm:$0xff] %vm530_vm2, %v510_v51  ;;  %v462_v54 = vpop.f32.mrf.mxu2  ;;  %v583_v56 = vsel %vm530_vm2, %v510_v51, -inf }
  0xbe   : > { %v463_v57 = vadd.f32 %v1125_v33, %v462_v54  ;;  %v588_v59 = vmax.f32 %v580_v53, %v597_v55  ;;  %v417_v60 = vpop.f32.mrf.mxu0 }
  0xbf   : > { %v486_v58 = vpop.f32.mrf.mxu3  ;;  %v418_v62 = vadd.f32 %v1125_v33, %v417_v60 }
  0xc0   : > { %v487_v61 = vadd.f32 %v1125_v33, %v486_v58  ;;  %v518_v63 = vmax.f32 %v463_v57, 0.0  ;;  %v441_v0 = vpop.f32.mrf.mxu1  ;;  %v610_v1 = vmax.f32 %v583_v56, %v588_v59 }
  0xc1   : > { %v442_v2 = vadd.f32 %v1125_v33, %v441_v0  ;;  %v503_v5 = vmax.f32 %v418_v62, 0.0 }
  0xc2   : > { %v526_v3 = vmax.f32 %v487_v61, 0.0  ;;  %551 = vst.msk [vmem:[%s1133_s14 + $0xa0] sm:$0xff] %vm530_vm2, %v518_v63  ;;  %v618_v6 = vmax.f32 %v610_v1, %v613_v4  ;;  %v599_v11 = vsel %vm530_vm2, %v518_v63, -inf }
  0xc3   : > { %v511_v7 = vmax.f32 %v442_v2, 0.0  ;;  %536 = vst.msk [vmem:[%s1133_s14 + $0x28] sm:$0xff] %vm530_vm2, %v503_v5  ;;  %v569_v8 = vsel %vm530_vm2, %v503_v5, -inf }
  0xc4   : > { %559 = vst.msk [vmem:[%s1133_s14 + $0xe0] sm:$0xff] %vm530_vm2, %v526_v3  ;;  %v623_v9 = vmax.f32 %v569_v8, %v618_v6  ;;  %v615_v24 = vsel %vm530_vm2, %v526_v3, -inf }
  0xc5   : > { %544 = vst.msk [vmem:[%s1133_s14 + $0x68] sm:$0xff] %vm530_vm2, %v511_v7  ;;  %v465_v10 = vpop.f32.mrf.mxu2  ;;  %v585_v12 = vsel %vm530_vm2, %v511_v7, -inf }
  0xc6   : > { %v466_v13 = vadd.f32 %v1125_v33, %v465_v10  ;;  %v574_v15 = vmax.f32 %v599_v11, %v623_v9  ;;  %v420_v16 = vpop.f32.mrf.mxu0 }
  0xc7   : > { %v489_v14 = vpop.f32.mrf.mxu3  ;;  %v421_v18 = vadd.f32 %v1125_v33, %v420_v16 }
  0xc8   : > { %v490_v17 = vadd.f32 %v1125_v33, %v489_v14  ;;  %v519_v19 = vmax.f32 %v466_v13, 0.0  ;;  %v444_v20 = vpop.f32.mrf.mxu1  ;;  %v596_v21 = vmax.f32 %v585_v12, %v574_v15 }
  0xc9   : > { %v445_v22 = vadd.f32 %v1125_v33, %v444_v20  ;;  %v504_v25 = vmax.f32 %v421_v18, 0.0 }
  0xca   : > { %v527_v23 = vmax.f32 %v490_v17, 0.0  ;;  %552 = vst.msk [vmem:[%s1133_s14 + $0xa8] sm:$0xff] %vm530_vm2, %v519_v19  ;;  %v604_v26 = vmax.f32 %v596_v21, %v615_v24  ;;  %v601_v31 = vsel %vm530_vm2, %v519_v19, -inf }
  0xcb   : > { %v512_v27 = vmax.f32 %v445_v22, 0.0  ;;  %537 = vst.msk [vmem:[%s1133_s14 + $0x30] sm:$0xff] %vm530_vm2, %v504_v25  ;;  %v571_v28 = vsel %vm530_vm2, %v504_v25, -inf }
  0xcc   : > { %560 = vst.msk [vmem:[%s1133_s14 + $0xe8] sm:$0xff] %vm530_vm2, %v527_v23  ;;  %v582_v29 = vmax.f32 %v571_v28, %v604_v26  ;;  %v617_v45 = vsel %vm530_vm2, %v527_v23, -inf }
  0xcd   : > { %545 = vst.msk [vmem:[%s1133_s14 + $0x70] sm:$0xff] %vm530_vm2, %v512_v27  ;;  %v468_v30 = vpop.f32.mrf.mxu2  ;;  %v587_v32 = vsel %vm530_vm2, %v512_v27, -inf }
  0xce   : > { %v469_v34 = vadd.f32 %v1125_v33, %v468_v30  ;;  %v590_v36 = vmax.f32 %v582_v29, %v601_v31  ;;  %v423_v37 = vpop.f32.mrf.mxu0 }
  0xcf   : > { %v492_v35 = vpop.f32.mrf.mxu3  ;;  %v424_v39 = vadd.f32 %v1125_v33, %v423_v37 }
  0xd0   : > { %v493_v38 = vadd.f32 %v1125_v33, %v492_v35  ;;  %v520_v40 = vmax.f32 %v469_v34, 0.0  ;;  %v447_v41 = vpop.f32.mrf.mxu1  ;;  %v612_v42 = vmax.f32 %v587_v32, %v590_v36 }
  0xd1   : > { %v448_v43 = vadd.f32 %v1125_v33, %v447_v41  ;;  %v505_v46 = vmax.f32 %v424_v39, 0.0 }
  0xd2   : > { %v528_v44 = vmax.f32 %v493_v38, 0.0  ;;  %553 = vst.msk [vmem:[%s1133_s14 + $0xb0] sm:$0xff] %vm530_vm2, %v520_v40  ;;  %v620_v47 = vmax.f32 %v612_v42, %v617_v45  ;;  %v603_v52 = vsel %vm530_vm2, %v520_v40, -inf }
  0xd3   : > { %v513_v48 = vmax.f32 %v448_v43, 0.0  ;;  %538 = vst.msk [vmem:[%s1133_s14 + $0x38] sm:$0xff] %vm530_vm2, %v505_v46  ;;  %v573_v49 = vsel %vm530_vm2, %v505_v46, -inf }
  0xd4   : > { %561 = vst.msk [vmem:[%s1133_s14 + $0xf0] sm:$0xff] %vm530_vm2, %v528_v44  ;;  %v598_v50 = vmax.f32 %v573_v49, %v620_v47  ;;  %v619_v61 = vsel %vm530_vm2, %v528_v44, -inf }
  0xd5   : > { %546 = vst.msk [vmem:[%s1133_s14 + $0x78] sm:$0xff] %vm530_vm2, %v513_v48  ;;  %v471_v51 = vpop.f32.mrf.mxu2  ;;  %v589_v53 = vsel %vm530_vm2, %v513_v48, -inf }
  0xd6   : > { %v472_v54 = vadd.f32 %v1125_v33, %v471_v51  ;;  %v606_v56 = vmax.f32 %v598_v50, %v603_v52 }
  0xd7   : > { %v495_v55 = vpop.f32.mrf.mxu3 }
  0xd8   : > { %v496_v57 = vadd.f32 %v1125_v33, %v495_v55  ;;  %v521_v58 = vmax.f32 %v472_v54, 0.0  ;;  %v614_v59 = vmax.f32 %v606_v56, %v589_v53 }
  0xda   : > { %v529_v60 = vmax.f32 %v496_v57, 0.0  ;;  %554 = vst.msk [vmem:[%s1133_s14 + $0xb8] sm:$0xff] %vm530_vm2, %v521_v58  ;;  %v605_v62 = vsel %vm530_vm2, %v521_v58, -inf  ;;  %v622_v63 = vmax.f32 %v614_v59, %v619_v61 }
  0xdc   : > { %562 = vst.msk [vmem:[%s1133_s14 + $0xf8] sm:$0xff] %vm530_vm2, %v529_v60  ;;  %v621_v0 = vsel %vm530_vm2, %v529_v60, -inf  ;;  %v624_v1 = vmax.f32 %v605_v62, %v622_v63 }
  0xde   : > { %v625_v2 = vmax.f32 %v621_v0, %v624_v1 }
  0xe0   : > { %v626_v3 = vrot.slane %v625_v2, 4 }
  0xe2   : > { %v627_v33 = vmax.f32 %v625_v2, %v626_v3 }
  0xe4   : > { %v628_v4 = vrot.slane %v627_v33, 2 }
  0xe6   : > { %v629_v5 = vmax.f32 %v627_v33, %v628_v4 }
  0xe8   : > { %v630_v6 = vrot.slane %v629_v5, 1 }
  0xea   : > { %v631_v7 = vmax.f32 %v629_v5, %v630_v6 }
  0xec   : > { %637 = vst.msk [vmem:[%s226_s29] sm:$0x1] %vm636_vm3, %v631_v7 }
  0xed   : > { %910 = shalt.err (!%p907_p5)
}
  0xee   : > { %827 = dma.vmem_to_hbm [thread:$0]  (%p1028_p4), %s671_s30, 16, %s673_s5, %s656_s6  }
  0xef PF: > { %p833_p6 = scmp.ge.s32.totalorder %s961_s20, 2  ;;  %s696_s13 = sand.u32 1, %s941_s15  }
  0xf0   : > { %s697_s14 = scalar_lea.sflag [#allocation3], %s696_s13 }
  0xf1   : > { %p830_p7 = pnand %p833_p6, %p1035_p8 }
  0xf3   : > { %p831_p9 = pneg %p830_p7 }
  0xf5   : > { %936 = dma.done.wait (%p831_p9), %s697_s14, 16  }
  0xf6   : > { %938 = vsyncadd (%p831_p9), %s697_s14, 4294967280  ;;  %s18_s20 = sadd.s32 1, %s961_s20   ;;  %s1306_s15 = smov %s945_s16 }
  0xf7   : > { %p15_p10 = scmp.ge.s32.totalorder %s18_s20, 6   ;;  %s1307_s16 = smov %s949_s17 }
  0xf8   : > { %s1308_s17 = smov %s1041_s28  ;;  %s1309_s18 = smov %s957_s19 }
  0xf9   : > { %s1310_s19 = smov %s1312_s23  ;;  %17 = sbr.rel (!%p15_p10) target bundleno = 4 (0x4), region = 87 }
  0xfe   :  { %702 = vsyncpa [#allocation3], 1 }
  0xff   :  { %704 = vsyncpa [#allocation3 + $0x1], 1 }

</bundles_post_ra>
